<compile_context>
chip_gen: v6e
topology: v6e:2x2x1
jax: 0.10.0
libtpu: 0.0.40
codegen_flags: <defaults>
</compile_context>

<pallas_src>
import jax
import jax.numpy as jnp
from jax.experimental import pallas as pl
from jax.experimental.pallas import tpu as pltpu


HIDDEN = 16  # LSTM hidden size from the module


def lstm_fc_kernel(x_ref, p_ref, out_ref):
    """Single-invocation kernel: whole sequence resident in VMEM.

    x_ref   : (T, B, I)       time-major input
    p_ref   : (I+H+2, 4H)     packed params:
                rows [0:I)      -> W_ih^T  (I, 4H)   gate order (i, f, o, g)
                rows [I:I+H)    -> W_hh^T  (H, 4H)   gate order (i, f, o, g)
                row  [I+H]      -> b_ih + b_hh       gate order (i, f, o, g)
                row  [I+H+1]    -> [w_fc (H), b_fc (1), zeros...]
    out_ref : (B, 1)
    """
    T, B, I = x_ref.shape
    H = HIDDEN

    # Static slices of the packed parameter block (hoisted, loop-invariant).
    wih = p_ref[0:I, :]                          # (I, 4H)
    whh = p_ref[I:I + H, :]                      # (H, 4H)
    b = p_ref[I + H:I + H + 1, :]                # (1, 4H)
    fc_w = p_ref[I + H + 1:I + H + 2, 0:H]       # (1, H)
    fc_b = p_ref[I + H + 1:I + H + 2, H:H + 1]   # (1, 1)

    # Fused input projection for ALL time steps in one MXU call, time-major:
    # (T*B, I) @ (I, 4H) + b -> (T, B, 4H). Minor (lane) dim is preserved by
    # the reshapes, so they are layout-cheap; per-step reads below are pure
    # leading-dim slices.
    xg = (jnp.dot(x_ref[...].reshape(T * B, I), wih,
                  preferred_element_type=jnp.float32) + b).reshape(T, B, 4 * H)

    h = jnp.zeros((B, H), jnp.float32)
    c = jnp.zeros((B, H), jnp.float32)

    # Fully-unrolled time recurrence (T small and static): one recurrent
    # matmul, one sigmoid over the contiguous (i, f, o) columns, two tanh.
    for t in range(T):
        gates = xg[t] + jnp.dot(h, whh, preferred_element_type=jnp.float32)
        s = jax.nn.sigmoid(gates[:, 0:3 * H])    # i, f, o (contiguous)
        g_g = jnp.tanh(gates[:, 3 * H:4 * H])    # g
        i_g = s[:, 0:H]
        f_g = s[:, H:2 * H]
        o_g = s[:, 2 * H:3 * H]
        c = f_g * c + i_g * g_g
        h = o_g * jnp.tanh(c)

    # Dropout(0.25) in eval mode == identity.
    # Linear(16, 1) as VPU multiply + lane reduce (no N=1 MXU round trip).
    out_ref[...] = jnp.sum(h * fc_w, axis=-1, keepdims=True) + fc_b


def lstm_fc_forward(x, w_ih, w_hh, b_ih, b_hh, w_fc, b_fc):
    """x: (B, T, I) batch_first float32. Weights in PyTorch layout:
       w_ih (4H, I), w_hh (4H, H), b_ih (4H,), b_hh (4H,), w_fc (1, H), b_fc (1,)."""
    B, T, I = x.shape
    H = HIDDEN

    # One-time, tiny wrapper-side prep (all << 1 KiB except x, which is a few KiB).
    # 1) time-major input
    x_tm = jnp.transpose(x, (1, 0, 2)).astype(jnp.float32)            # (T, B, I)

    # 2) permute PyTorch gate order (i, f, g, o) -> (i, f, o, g)
    perm = jnp.concatenate([jnp.arange(0, H), jnp.arange(H, 2 * H),
                            jnp.arange(3 * H, 4 * H), jnp.arange(2 * H, 3 * H)])
    wih_t = jnp.transpose(w_ih[perm]).astype(jnp.float32)              # (I, 4H)
    whh_t = jnp.transpose(w_hh[perm]).astype(jnp.float32)              # (H, 4H)
    b_comb = (b_ih + b_hh)[perm].astype(jnp.float32)                   # (4H,)

    # 3) pack all parameters into a single VMEM operand -> 2 prologue DMAs total.
    params = jnp.zeros((I + H + 2, 4 * H), jnp.float32)
    params = params.at[0:I, :].set(wih_t)
    params = params.at[I:I + H, :].set(whh_t)
    params = params.at[I + H, :].set(b_comb)
    params = params.at[I + H + 1, 0:H].set(w_fc.reshape(H).astype(jnp.float32))
    params = params.at[I + H + 1, H].set(b_fc.reshape(()).astype(jnp.float32))

    vmem = pl.BlockSpec(memory_space=pltpu.MemorySpace.VMEM)
    out = pl.pallas_call(
        lstm_fc_kernel,
        out_shape=jax.ShapeDtypeStruct((B, 1), jnp.float32),
        in_specs=[vmem, vmem],
        out_specs=vmem,
    )(x_tm, params)
    return out


def ref_forward(x, w_ih, w_hh, b_ih, b_hh, w_fc, b_fc):
    """Pure-JAX reference matching torch.nn.LSTM + Linear semantics."""
    B, T, I = x.shape
    H = HIDDEN
    h = jnp.zeros((B, H), jnp.float32)
    c = jnp.zeros((B, H), jnp.float32)
    for t in range(T):
        gates = x[:, t] @ w_ih.T + b_ih + h @ w_hh.T + b_hh
        i_g = jax.nn.sigmoid(gates[:, 0:H])
        f_g = jax.nn.sigmoid(gates[:, H:2 * H])
        g_g = jnp.tanh(gates[:, 2 * H:3 * H])
        o_g = jax.nn.sigmoid(gates[:, 3 * H:4 * H])
        c = f_g * c + i_g * g_g
        h = o_g * jnp.tanh(c)
    return h @ w_fc.T + b_fc


if __name__ == "__main__":
    # Small, module-consistent shapes: batch=8 (fills sublanes), seq=8,
    # nInputs=8, hidden=16.
    B, T, I, H = 8, 8, 8, HIDDEN
    key = jax.random.PRNGKey(0)
    k = jax.random.split(key, 8)

    # Deterministic parameter init, PyTorch-style U(-1/sqrt(H), 1/sqrt(H)).
    s = 1.0 / jnp.sqrt(jnp.float32(H))
    w_ih = jax.random.uniform(k[0], (4 * H, I), jnp.float32, -s, s)
    w_hh = jax.random.uniform(k[1], (4 * H, H), jnp.float32, -s, s)
    b_ih = jax.random.uniform(k[2], (4 * H,), jnp.float32, -s, s)
    b_hh = jax.random.uniform(k[3], (4 * H,), jnp.float32, -s, s)
    w_fc = jax.random.uniform(k[4], (1, H), jnp.float32, -s, s)
    b_fc = jax.random.uniform(k[5], (1,), jnp.float32, -s, s)

    x = jax.random.normal(k[6], (B, T, I), jnp.float32)

    out = lstm_fc_forward(x, w_ih, w_hh, b_ih, b_hh, w_fc, b_fc)
    out = jax.block_until_ready(out)

    ref = ref_forward(x, w_ih, w_hh, b_ih, b_hh, w_fc, b_fc)
    assert out.shape == (B, 1), out.shape
    assert jnp.allclose(out, ref, atol=1e-4, rtol=1e-4), (out, ref)

    print("KERNEL_OK")
</pallas_src>

<mosaic_0001>
module attributes {stable_mosaic.version = 11 : i64} {
  func.func @lstm_fc_kernel(%arg0: memref<8x8x8xf32, #tpu.memory_space<vmem>>, %arg1: memref<26x64xf32, #tpu.memory_space<vmem>>, %arg2: memref<8x1xf32, #tpu.memory_space<vmem>>) attributes {dimension_semantics = [], scalar_prefetch = 0 : i64, scratch_operands = 0 : i64, tpu.core_type = #tpu.core_type<tc>} {
    %c0 = arith.constant 0 : index
    %c0_0 = arith.constant 0 : index
    %0 = vector.load %arg1[%c0, %c0_0] : memref<26x64xf32, #tpu.memory_space<vmem>>, vector<8x64xf32>
    %c8 = arith.constant 8 : index
    %c0_1 = arith.constant 0 : index
    %1 = vector.load %arg1[%c8, %c0_1] : memref<26x64xf32, #tpu.memory_space<vmem>>, vector<16x64xf32>
    %c24 = arith.constant 24 : index
    %c0_2 = arith.constant 0 : index
    %2 = vector.load %arg1[%c24, %c0_2] : memref<26x64xf32, #tpu.memory_space<vmem>>, vector<1x64xf32>
    %c25 = arith.constant 25 : index
    %c0_3 = arith.constant 0 : index
    %3 = vector.load %arg1[%c25, %c0_3] : memref<26x64xf32, #tpu.memory_space<vmem>>, vector<1x16xf32>
    %c25_4 = arith.constant 25 : index
    %c16 = arith.constant 16 : index
    %4 = vector.load %arg1[%c25_4, %c16] : memref<26x64xf32, #tpu.memory_space<vmem>>, vector<1x1xf32>
    %c0_5 = arith.constant 0 : index
    %c0_6 = arith.constant 0 : index
    %c0_7 = arith.constant 0 : index
    %5 = vector.load %arg0[%c0_5, %c0_6, %c0_7] : memref<8x8x8xf32, #tpu.memory_space<vmem>>, vector<8x8x8xf32>
    %6 = vector.shape_cast %5 : vector<8x8x8xf32> to vector<64x8xf32>
    %cst = arith.constant dense<0.000000e+00> : vector<64x64xf32>
    %7 = tpu.matmul %6, %0, %cst {dimension_numbers = #tpu.dot_dimension_numbers<[1], [0], [0], [1], [0, 0, 1, 1], [], []>} : vector<64x8xf32>, vector<8x64xf32>, vector<64x64xf32> -> vector<64x64xf32>
    %8 = vector.broadcast %2 : vector<1x64xf32> to vector<64x64xf32>
    %9 = arith.addf %7, %8 : vector<64x64xf32>
    %10 = vector.shape_cast %9 : vector<64x64xf32> to vector<8x8x64xf32>
    %cst_8 = arith.constant 0.000000e+00 : f32
    %11 = vector.broadcast %cst_8 : f32 to vector<8x16xf32>
    %cst_9 = arith.constant 0.000000e+00 : f32
    %12 = vector.broadcast %cst_9 : f32 to vector<8x16xf32>
    %13 = vector.extract_strided_slice %10 {offsets = [0, 0, 0], sizes = [1, 8, 64], strides = [1, 1, 1]} : vector<8x8x64xf32> to vector<1x8x64xf32>
    %14 = vector.shape_cast %13 : vector<1x8x64xf32> to vector<8x64xf32>
    %cst_10 = arith.constant dense<0.000000e+00> : vector<8x64xf32>
    %15 = tpu.matmul %11, %1, %cst_10 {dimension_numbers = #tpu.dot_dimension_numbers<[1], [0], [0], [1], [0, 0, 1, 1], [], []>} : vector<8x16xf32>, vector<16x64xf32>, vector<8x64xf32> -> vector<8x64xf32>
    %16 = arith.addf %14, %15 : vector<8x64xf32>
    %17 = vector.extract_strided_slice %16 {offsets = [0, 0], sizes = [8, 48], strides = [1, 1]} : vector<8x64xf32> to vector<8x48xf32>
    %18 = arith.negf %17 : vector<8x48xf32>
    %19 = math.exp %18 : vector<8x48xf32>
    %cst_11 = arith.constant 1.000000e+00 : f32
    %20 = vector.broadcast %cst_11 : f32 to vector<8x48xf32>
    %21 = arith.addf %20, %19 : vector<8x48xf32>
    %22 = arith.divf %20, %21 : vector<8x48xf32>
    %23 = vector.extract_strided_slice %16 {offsets = [0, 48], sizes = [8, 16], strides = [1, 1]} : vector<8x64xf32> to vector<8x16xf32>
    %24 = math.tanh %23 : vector<8x16xf32>
    %25 = vector.extract_strided_slice %22 {offsets = [0, 0], sizes = [8, 16], strides = [1, 1]} : vector<8x48xf32> to vector<8x16xf32>
    %26 = vector.extract_strided_slice %22 {offsets = [0, 16], sizes = [8, 16], strides = [1, 1]} : vector<8x48xf32> to vector<8x16xf32>
    %27 = vector.extract_strided_slice %22 {offsets = [0, 32], sizes = [8, 16], strides = [1, 1]} : vector<8x48xf32> to vector<8x16xf32>
    %28 = arith.mulf %26, %12 : vector<8x16xf32>
    %29 = arith.mulf %25, %24 : vector<8x16xf32>
    %30 = arith.addf %28, %29 : vector<8x16xf32>
    %31 = math.tanh %30 : vector<8x16xf32>
    %32 = arith.mulf %27, %31 : vector<8x16xf32>
    %33 = vector.extract_strided_slice %10 {offsets = [1, 0, 0], sizes = [1, 8, 64], strides = [1, 1, 1]} : vector<8x8x64xf32> to vector<1x8x64xf32>
    %34 = vector.shape_cast %33 : vector<1x8x64xf32> to vector<8x64xf32>
    %cst_12 = arith.constant dense<0.000000e+00> : vector<8x64xf32>
    %35 = tpu.matmul %32, %1, %cst_12 {dimension_numbers = #tpu.dot_dimension_numbers<[1], [0], [0], [1], [0, 0, 1, 1], [], []>} : vector<8x16xf32>, vector<16x64xf32>, vector<8x64xf32> -> vector<8x64xf32>
    %36 = arith.addf %34, %35 : vector<8x64xf32>
    %37 = vector.extract_strided_slice %36 {offsets = [0, 0], sizes = [8, 48], strides = [1, 1]} : vector<8x64xf32> to vector<8x48xf32>
    %38 = arith.negf %37 : vector<8x48xf32>
    %39 = math.exp %38 : vector<8x48xf32>
    %cst_13 = arith.constant 1.000000e+00 : f32
    %40 = vector.broadcast %cst_13 : f32 to vector<8x48xf32>
    %41 = arith.addf %40, %39 : vector<8x48xf32>
    %42 = arith.divf %40, %41 : vector<8x48xf32>
    %43 = vector.extract_strided_slice %36 {offsets = [0, 48], sizes = [8, 16], strides = [1, 1]} : vector<8x64xf32> to vector<8x16xf32>
    %44 = math.tanh %43 : vector<8x16xf32>
    %45 = vector.extract_strided_slice %42 {offsets = [0, 0], sizes = [8, 16], strides = [1, 1]} : vector<8x48xf32> to vector<8x16xf32>
    %46 = vector.extract_strided_slice %42 {offsets = [0, 16], sizes = [8, 16], strides = [1, 1]} : vector<8x48xf32> to vector<8x16xf32>
    %47 = vector.extract_strided_slice %42 {offsets = [0, 32], sizes = [8, 16], strides = [1, 1]} : vector<8x48xf32> to vector<8x16xf32>
    %48 = arith.mulf %46, %30 : vector<8x16xf32>
    %49 = arith.mulf %45, %44 : vector<8x16xf32>
    %50 = arith.addf %48, %49 : vector<8x16xf32>
    %51 = math.tanh %50 : vector<8x16xf32>
    %52 = arith.mulf %47, %51 : vector<8x16xf32>
    %53 = vector.extract_strided_slice %10 {offsets = [2, 0, 0], sizes = [1, 8, 64], strides = [1, 1, 1]} : vector<8x8x64xf32> to vector<1x8x64xf32>
    %54 = vector.shape_cast %53 : vector<1x8x64xf32> to vector<8x64xf32>
    %cst_14 = arith.constant dense<0.000000e+00> : vector<8x64xf32>
    %55 = tpu.matmul %52, %1, %cst_14 {dimension_numbers = #tpu.dot_dimension_numbers<[1], [0], [0], [1], [0, 0, 1, 1], [], []>} : vector<8x16xf32>, vector<16x64xf32>, vector<8x64xf32> -> vector<8x64xf32>
    %56 = arith.addf %54, %55 : vector<8x64xf32>
    %57 = vector.extract_strided_slice %56 {offsets = [0, 0], sizes = [8, 48], strides = [1, 1]} : vector<8x64xf32> to vector<8x48xf32>
    %58 = arith.negf %57 : vector<8x48xf32>
    %59 = math.exp %58 : vector<8x48xf32>
    %cst_15 = arith.constant 1.000000e+00 : f32
    %60 = vector.broadcast %cst_15 : f32 to vector<8x48xf32>
    %61 = arith.addf %60, %59 : vector<8x48xf32>
    %62 = arith.divf %60, %61 : vector<8x48xf32>
    %63 = vector.extract_strided_slice %56 {offsets = [0, 48], sizes = [8, 16], strides = [1, 1]} : vector<8x64xf32> to vector<8x16xf32>
    %64 = math.tanh %63 : vector<8x16xf32>
    %65 = vector.extract_strided_slice %62 {offsets = [0, 0], sizes = [8, 16], strides = [1, 1]} : vector<8x48xf32> to vector<8x16xf32>
    %66 = vector.extract_strided_slice %62 {offsets = [0, 16], sizes = [8, 16], strides = [1, 1]} : vector<8x48xf32> to vector<8x16xf32>
    %67 = vector.extract_strided_slice %62 {offsets = [0, 32], sizes = [8, 16], strides = [1, 1]} : vector<8x48xf32> to vector<8x16xf32>
    %68 = arith.mulf %66, %50 : vector<8x16xf32>
    %69 = arith.mulf %65, %64 : vector<8x16xf32>
    %70 = arith.addf %68, %69 : vector<8x16xf32>
    %71 = math.tanh %70 : vector<8x16xf32>
    %72 = arith.mulf %67, %71 : vector<8x16xf32>
    %73 = vector.extract_strided_slice %10 {offsets = [3, 0, 0], sizes = [1, 8, 64], strides = [1, 1, 1]} : vector<8x8x64xf32> to vector<1x8x64xf32>
    %74 = vector.shape_cast %73 : vector<1x8x64xf32> to vector<8x64xf32>
    %cst_16 = arith.constant dense<0.000000e+00> : vector<8x64xf32>
    %75 = tpu.matmul %72, %1, %cst_16 {dimension_numbers = #tpu.dot_dimension_numbers<[1], [0], [0], [1], [0, 0, 1, 1], [], []>} : vector<8x16xf32>, vector<16x64xf32>, vector<8x64xf32> -> vector<8x64xf32>
    %76 = arith.addf %74, %75 : vector<8x64xf32>
    %77 = vector.extract_strided_slice %76 {offsets = [0, 0], sizes = [8, 48], strides = [1, 1]} : vector<8x64xf32> to vector<8x48xf32>
    %78 = arith.negf %77 : vector<8x48xf32>
    %79 = math.exp %78 : vector<8x48xf32>
    %cst_17 = arith.constant 1.000000e+00 : f32
    %80 = vector.broadcast %cst_17 : f32 to vector<8x48xf32>
    %81 = arith.addf %80, %79 : vector<8x48xf32>
    %82 = arith.divf %80, %81 : vector<8x48xf32>
    %83 = vector.extract_strided_slice %76 {offsets = [0, 48], sizes = [8, 16], strides = [1, 1]} : vector<8x64xf32> to vector<8x16xf32>
    %84 = math.tanh %83 : vector<8x16xf32>
    %85 = vector.extract_strided_slice %82 {offsets = [0, 0], sizes = [8, 16], strides = [1, 1]} : vector<8x48xf32> to vector<8x16xf32>
    %86 = vector.extract_strided_slice %82 {offsets = [0, 16], sizes = [8, 16], strides = [1, 1]} : vector<8x48xf32> to vector<8x16xf32>
    %87 = vector.extract_strided_slice %82 {offsets = [0, 32], sizes = [8, 16], strides = [1, 1]} : vector<8x48xf32> to vector<8x16xf32>
    %88 = arith.mulf %86, %70 : vector<8x16xf32>
    %89 = arith.mulf %85, %84 : vector<8x16xf32>
    %90 = arith.addf %88, %89 : vector<8x16xf32>
    %91 = math.tanh %90 : vector<8x16xf32>
    %92 = arith.mulf %87, %91 : vector<8x16xf32>
    %93 = vector.extract_strided_slice %10 {offsets = [4, 0, 0], sizes = [1, 8, 64], strides = [1, 1, 1]} : vector<8x8x64xf32> to vector<1x8x64xf32>
    %94 = vector.shape_cast %93 : vector<1x8x64xf32> to vector<8x64xf32>
    %cst_18 = arith.constant dense<0.000000e+00> : vector<8x64xf32>
    %95 = tpu.matmul %92, %1, %cst_18 {dimension_numbers = #tpu.dot_dimension_numbers<[1], [0], [0], [1], [0, 0, 1, 1], [], []>} : vector<8x16xf32>, vector<16x64xf32>, vector<8x64xf32> -> vector<8x64xf32>
    %96 = arith.addf %94, %95 : vector<8x64xf32>
    %97 = vector.extract_strided_slice %96 {offsets = [0, 0], sizes = [8, 48], strides = [1, 1]} : vector<8x64xf32> to vector<8x48xf32>
    %98 = arith.negf %97 : vector<8x48xf32>
    %99 = math.exp %98 : vector<8x48xf32>
    %cst_19 = arith.constant 1.000000e+00 : f32
    %100 = vector.broadcast %cst_19 : f32 to vector<8x48xf32>
    %101 = arith.addf %100, %99 : vector<8x48xf32>
    %102 = arith.divf %100, %101 : vector<8x48xf32>
    %103 = vector.extract_strided_slice %96 {offsets = [0, 48], sizes = [8, 16], strides = [1, 1]} : vector<8x64xf32> to vector<8x16xf32>
    %104 = math.tanh %103 : vector<8x16xf32>
    %105 = vector.extract_strided_slice %102 {offsets = [0, 0], sizes = [8, 16], strides = [1, 1]} : vector<8x48xf32> to vector<8x16xf32>
    %106 = vector.extract_strided_slice %102 {offsets = [0, 16], sizes = [8, 16], strides = [1, 1]} : vector<8x48xf32> to vector<8x16xf32>
    %107 = vector.extract_strided_slice %102 {offsets = [0, 32], sizes = [8, 16], strides = [1, 1]} : vector<8x48xf32> to vector<8x16xf32>
    %108 = arith.mulf %106, %90 : vector<8x16xf32>
    %109 = arith.mulf %105, %104 : vector<8x16xf32>
    %110 = arith.addf %108, %109 : vector<8x16xf32>
    %111 = math.tanh %110 : vector<8x16xf32>
    %112 = arith.mulf %107, %111 : vector<8x16xf32>
    %113 = vector.extract_strided_slice %10 {offsets = [5, 0, 0], sizes = [1, 8, 64], strides = [1, 1, 1]} : vector<8x8x64xf32> to vector<1x8x64xf32>
    %114 = vector.shape_cast %113 : vector<1x8x64xf32> to vector<8x64xf32>
    %cst_20 = arith.constant dense<0.000000e+00> : vector<8x64xf32>
    %115 = tpu.matmul %112, %1, %cst_20 {dimension_numbers = #tpu.dot_dimension_numbers<[1], [0], [0], [1], [0, 0, 1, 1], [], []>} : vector<8x16xf32>, vector<16x64xf32>, vector<8x64xf32> -> vector<8x64xf32>
    %116 = arith.addf %114, %115 : vector<8x64xf32>
    %117 = vector.extract_strided_slice %116 {offsets = [0, 0], sizes = [8, 48], strides = [1, 1]} : vector<8x64xf32> to vector<8x48xf32>
    %118 = arith.negf %117 : vector<8x48xf32>
    %119 = math.exp %118 : vector<8x48xf32>
    %cst_21 = arith.constant 1.000000e+00 : f32
    %120 = vector.broadcast %cst_21 : f32 to vector<8x48xf32>
    %121 = arith.addf %120, %119 : vector<8x48xf32>
    %122 = arith.divf %120, %121 : vector<8x48xf32>
    %123 = vector.extract_strided_slice %116 {offsets = [0, 48], sizes = [8, 16], strides = [1, 1]} : vector<8x64xf32> to vector<8x16xf32>
    %124 = math.tanh %123 : vector<8x16xf32>
    %125 = vector.extract_strided_slice %122 {offsets = [0, 0], sizes = [8, 16], strides = [1, 1]} : vector<8x48xf32> to vector<8x16xf32>
    %126 = vector.extract_strided_slice %122 {offsets = [0, 16], sizes = [8, 16], strides = [1, 1]} : vector<8x48xf32> to vector<8x16xf32>
    %127 = vector.extract_strided_slice %122 {offsets = [0, 32], sizes = [8, 16], strides = [1, 1]} : vector<8x48xf32> to vector<8x16xf32>
    %128 = arith.mulf %126, %110 : vector<8x16xf32>
    %129 = arith.mulf %125, %124 : vector<8x16xf32>
    %130 = arith.addf %128, %129 : vector<8x16xf32>
    %131 = math.tanh %130 : vector<8x16xf32>
    %132 = arith.mulf %127, %131 : vector<8x16xf32>
    %133 = vector.extract_strided_slice %10 {offsets = [6, 0, 0], sizes = [1, 8, 64], strides = [1, 1, 1]} : vector<8x8x64xf32> to vector<1x8x64xf32>
    %134 = vector.shape_cast %133 : vector<1x8x64xf32> to vector<8x64xf32>
    %cst_22 = arith.constant dense<0.000000e+00> : vector<8x64xf32>
    %135 = tpu.matmul %132, %1, %cst_22 {dimension_numbers = #tpu.dot_dimension_numbers<[1], [0], [0], [1], [0, 0, 1, 1], [], []>} : vector<8x16xf32>, vector<16x64xf32>, vector<8x64xf32> -> vector<8x64xf32>
    %136 = arith.addf %134, %135 : vector<8x64xf32>
    %137 = vector.extract_strided_slice %136 {offsets = [0, 0], sizes = [8, 48], strides = [1, 1]} : vector<8x64xf32> to vector<8x48xf32>
    %138 = arith.negf %137 : vector<8x48xf32>
    %139 = math.exp %138 : vector<8x48xf32>
    %cst_23 = arith.constant 1.000000e+00 : f32
    %140 = vector.broadcast %cst_23 : f32 to vector<8x48xf32>
    %141 = arith.addf %140, %139 : vector<8x48xf32>
    %142 = arith.divf %140, %141 : vector<8x48xf32>
    %143 = vector.extract_strided_slice %136 {offsets = [0, 48], sizes = [8, 16], strides = [1, 1]} : vector<8x64xf32> to vector<8x16xf32>
    %144 = math.tanh %143 : vector<8x16xf32>
    %145 = vector.extract_strided_slice %142 {offsets = [0, 0], sizes = [8, 16], strides = [1, 1]} : vector<8x48xf32> to vector<8x16xf32>
    %146 = vector.extract_strided_slice %142 {offsets = [0, 16], sizes = [8, 16], strides = [1, 1]} : vector<8x48xf32> to vector<8x16xf32>
    %147 = vector.extract_strided_slice %142 {offsets = [0, 32], sizes = [8, 16], strides = [1, 1]} : vector<8x48xf32> to vector<8x16xf32>
    %148 = arith.mulf %146, %130 : vector<8x16xf32>
    %149 = arith.mulf %145, %144 : vector<8x16xf32>
    %150 = arith.addf %148, %149 : vector<8x16xf32>
    %151 = math.tanh %150 : vector<8x16xf32>
    %152 = arith.mulf %147, %151 : vector<8x16xf32>
    %153 = vector.extract_strided_slice %10 {offsets = [7, 0, 0], sizes = [1, 8, 64], strides = [1, 1, 1]} : vector<8x8x64xf32> to vector<1x8x64xf32>
    %154 = vector.shape_cast %153 : vector<1x8x64xf32> to vector<8x64xf32>
    %cst_24 = arith.constant dense<0.000000e+00> : vector<8x64xf32>
    %155 = tpu.matmul %152, %1, %cst_24 {dimension_numbers = #tpu.dot_dimension_numbers<[1], [0], [0], [1], [0, 0, 1, 1], [], []>} : vector<8x16xf32>, vector<16x64xf32>, vector<8x64xf32> -> vector<8x64xf32>
    %156 = arith.addf %154, %155 : vector<8x64xf32>
    %157 = vector.extract_strided_slice %156 {offsets = [0, 0], sizes = [8, 48], strides = [1, 1]} : vector<8x64xf32> to vector<8x48xf32>
    %158 = arith.negf %157 : vector<8x48xf32>
    %159 = math.exp %158 : vector<8x48xf32>
    %cst_25 = arith.constant 1.000000e+00 : f32
    %160 = vector.broadcast %cst_25 : f32 to vector<8x48xf32>
    %161 = arith.addf %160, %159 : vector<8x48xf32>
    %162 = arith.divf %160, %161 : vector<8x48xf32>
    %163 = vector.extract_strided_slice %156 {offsets = [0, 48], sizes = [8, 16], strides = [1, 1]} : vector<8x64xf32> to vector<8x16xf32>
    %164 = math.tanh %163 : vector<8x16xf32>
    %165 = vector.extract_strided_slice %162 {offsets = [0, 0], sizes = [8, 16], strides = [1, 1]} : vector<8x48xf32> to vector<8x16xf32>
    %166 = vector.extract_strided_slice %162 {offsets = [0, 16], sizes = [8, 16], strides = [1, 1]} : vector<8x48xf32> to vector<8x16xf32>
    %167 = vector.extract_strided_slice %162 {offsets = [0, 32], sizes = [8, 16], strides = [1, 1]} : vector<8x48xf32> to vector<8x16xf32>
    %168 = arith.mulf %166, %150 : vector<8x16xf32>
    %169 = arith.mulf %165, %164 : vector<8x16xf32>
    %170 = arith.addf %168, %169 : vector<8x16xf32>
    %171 = math.tanh %170 : vector<8x16xf32>
    %172 = arith.mulf %167, %171 : vector<8x16xf32>
    %173 = vector.broadcast %3 : vector<1x16xf32> to vector<8x16xf32>
    %174 = arith.mulf %172, %173 : vector<8x16xf32>
    %cst_26 = arith.constant dense<0.000000e+00> : vector<8xf32>
    %175 = vector.multi_reduction <add>, %174, %cst_26 [1] : vector<8x16xf32> to vector<8xf32>
    %176 = vector.shape_cast %175 : vector<8xf32> to vector<8x1xf32>
    %177 = vector.broadcast %4 : vector<1x1xf32> to vector<8x1xf32>
    %178 = arith.addf %176, %177 : vector<8x1xf32>
    %c0_27 = arith.constant 0 : index
    %c0_28 = arith.constant 0 : index
    %179 = vector.load %arg2[%c0_27, %c0_28] : memref<8x1xf32, #tpu.memory_space<vmem>>, vector<8x1xf32>
    tpu.vector_store %arg2[%c0_27, %c0_28], %178 {strides = array<i32>} : memref<8x1xf32, #tpu.memory_space<vmem>>, vector<8x1xf32>,
    return
  }
}

</mosaic_0001>

<bundles_post_ra>
// kernel: tpu_custom_call.1
= control target key start
LH: loop header
LB: loop body
LE: loop exit
PB: predicated region body
PF: predicated region fallthrough
CT: control target
= control target key end

     0   :  { %7 = vsyncpa [#allocation3], 0  ;;  %s1410_s0 = inlined_call_operand.hbm [shape: f32[8,8,8], index: 0, kind: input, shape index: {}]   ;;  %s1411_s1 = inlined_call_operand.hbm [shape: f32[26,64], index: 1, kind: input, shape index: {}]   ;;  %s1412_s2 = inlined_call_operand.vmem [shape: f32[8,1], index: 2, kind: output, shape index: {}]  }
   0x1   :  { %8 = vsyncpa [#allocation5], 0  ;;  %s1261_s9 = smov [#allocation2]  }
   0x2   :  { %s14_s10 = sshll.u32 %s1261_s9, 4  ;;  %s15_s10 = int_to_ptr.vmem [resolvable:$true] %s14_s10 }
   0x3   :  { %s1225_s11 = scalar_lea.vmem %s15_s10, 1024  ;;  %p1230_p1 = scmp.lt.s32.totalorder %s15_s10, %s15_s10 }
   0x4   :  { %p1226_p0 = scmp.ne.s32.totalorder %s15_s10, %s1225_s11  ;;  %p1231_p2 = scmp.lt.s32.totalorder %s1225_s11, %s1225_s11 }
   0x6   :  { %p1232_p3 = por %p1231_p2, %p1230_p1 }
   0x8   :  { %p1233_p4 = pnand %p1232_p3, %p1226_p0 }
   0xa   :  { %1236 = shalt.err (!%p1233_p4)
}
   0xb   :  { %s1262_s12 = smov 128   ;;  %s1263_s13 = smov 8  }
   0xc   :  { %20 = dma.hbm_to_vmem [thread:$0]  %s1410_s0, 1024, %s15_s10, [#allocation3], %s1262_s12, %s1262_s12, %s1263_s13  }
   0xd   :  { %s1264_s16 = smov [#allocation4]  }
   0xe   :  { %s26_s17 = sshll.u32 %s1264_s16, 4  ;;  %s27_s17 = int_to_ptr.vmem [resolvable:$true] %s26_s17 }
   0xf   :  { %s1245_s18 = scalar_lea.vmem %s27_s17, 512  ;;  %p1250_p6 = scmp.lt.s32.totalorder %s27_s17, %s27_s17 }
  0x10   :  { %p1246_p5 = scmp.ne.s32.totalorder %s27_s17, %s1245_s18  ;;  %p1251_p7 = scmp.lt.s32.totalorder %s1245_s18, %s1245_s18 }
  0x12   :  { %p1252_p8 = por %p1251_p7, %p1250_p6 }
  0x14   :  { %p1253_p9 = pnand %p1252_p8, %p1246_p5 }
  0x16   :  { %1256 = shalt.err (!%p1253_p9)
}
  0x17   :  { %32 = dma.hbm_to_vmem [thread:$0]  %s1411_s1, 512, %s27_s17, [#allocation5], %s1262_s12, %s1262_s12, %s1263_s13  }
  0x18   :  { %1257 = dma.done.wait [#allocation3], 1024  }
  0x19   :  { %1258 = vsyncadd [#allocation3], 4294966272 }
  0x1a   :  { %1259 = dma.done.wait [#allocation5], 512  }
  0x1b   :  { %1260 = vsyncadd [#allocation5], 4294966784  ;;  %v1265_v0 = vmov 0.0   ;;  %vm1266_vm0 = vmmov 0   ;;  %vm56_vm1 = vcmask 64512   ;;  %v39_v1 = vld [vmem:[#allocation4] sm:$0xff] }
  0x1c   :  { %1086 = vmatprep.subr.mxu1 %v1265_v0  ;;  %1090 = vmatprep.mubr.msk.f32.mxu1 %vm1266_vm0, %v1265_v0  ;;  %v44_v2 = vld [vmem:[#allocation2] sm:$0xff]  ;;  %v1296_v3 = vld [vmem:[#allocation4 + $0x10] sm:$0xff]  ;;  %v45_v4 = vld [vmem:[#allocation2 + $0x8] sm:$0xff]  ;;  %s1267_s0 = smov 80   ;;  %s1268_s1 = smov 16   ;;  %vm186_vm2 = vcmask 130048  }
  0x1d   :  { %1072 = vmatprep.subr.mxu0 %v39_v1  ;;  %1074 = vmatprep.mubr.msk.f32.mxu0 %vm56_vm1, %v44_v2  ;;  %v1299_v5 = vld [vmem:[#allocation4 + $0x8] sm:$0xff]  ;;  %v1318_v7 = vld [vmem:[#allocation4 + $0x18] ss:$0 sm:$0xff]  ;;  %s1269_s21 = smov 96   ;;  %v46_v41 = vld [vmem:[#allocation2 + $0x10] sm:$0xff]  ;;  %s1270_s22 = smov 32  }
  0x1e   :  { %1073 = vmatpush3.msra.mxu0 %v39_v1  ;;  %1087 = vmatpush3.msra.mxu1 %v1296_v3  ;;  %v47_v42 = vld [vmem:[#allocation2 + $0x18] sm:$0xff]  ;;  %s1271_s23 = smov 112   ;;  %vm1006_vm3 = vcmask 7168  }
  0x1f   :  { %1075 = vmatmul.mubr.msk.f32.vlgmr.msra.gmra.mxu0 %vm56_vm1, %v45_v4  ;;  %1088 = vmatprep.subr.mxu1 %v1265_v0 }
  0x20   :  { %1089 = vmatpush3.msra.mxu1 %v1299_v5  ;;  %1114 = vmatprep.subr.mxu0 %v1265_v0 }
  0x21   :  { %1091 = vmatmul.mubr.f32.vlgmr.msra.gmra.mxu1 %v1265_v0  ;;  %1093 = vmatprep.subr.mxu1 %v1265_v0 }
  0x22   :  { %1094 = vmatpush3.msra.mxu1 %v1296_v3  ;;  %1097 = vmatprep.mubr.msk.f32.mxu1 %vm1266_vm0, %v1265_v0 }
  0x23   :  { %1095 = vmatprep.subr.mxu1 %v1265_v0  ;;  %1115 = vmatpush3.msra.mxu0 %v1296_v3 }
  0x24   :  { %1096 = vmatpush3.msra.mxu1 %v1299_v5  ;;  %1116 = vmatprep.subr.mxu0 %v1265_v0 }
  0x25   :  { %1100 = vmatprep.subr.mxu1 %v1265_v0  ;;  %1117 = vmatpush3.msra.mxu0 %v1299_v5 }
  0x26   :  { %1128 = vmatprep.subr.mxu0 %v1265_v0  ;;  %1077 = vmatprep.mubr.msk.f32.mxu0 %vm56_vm1, %v46_v41 }
  0x27   :  { %1078 = vmatmul.mubr.msk.f32.gmra.mxu0 %vm56_vm1, %v47_v42 }
  0xdf   :  { %v1076_v6 = vpop.f32.mrf.mxu0 }
  0xe0   :  { %v153_v27 = vadd.f32 %v1076_v6, %v1318_v7 }
  0xe1   :  { %v147_v8 = vpop.f32.mrf.mxu0  ;;  %v256_v9 = vpop.f32.mrf.mxu1 }
  0xe2   :  { %v148_v10 = vadd.f32 %v1318_v7, %v147_v8 }
  0xe3   :  { %v1092_v11 = vpop.f32.mrf.mxu1 }
  0xe4   :  { %v260_v12 = vadd.f32 %v256_v9, %v148_v10 }
  0xe6   :  { %1153 = vtanh.f32 %v260_v12  ;;  %v1023_v14 = vmul.f32 -1.442695, %v260_v12 }
  0xe7   :  { %v1079_v47 = vpop.f32.mrf.mxu0 }
  0xe8   :  { %1155 = vpow2.f32 %v1023_v14  ;;  %v163_v6 = vadd.f32 %v1079_v47, %v1318_v7 }
  0xe9   :  { %v157_v48 = vpop.f32.mrf.mxu0 }
  0xea   :  { %v158_v49 = vadd.f32 %v1318_v7, %v157_v48 }
  0xf3   :  { %v1154_v13 = vpop.eup %1153 }
  0xf4   :  { %270 = vrot.lane.b32.xlu0 %v1154_v13, %s1267_s0 }
  0xf5   :  { %v1156_v15 = vpop.eup %1155 }
  0xf6   :  { %v264_v16 = vadd.f32 1.0, %v1156_v15 }
  0xf8   :  { %1157 = vrcp.f32 %v264_v16 }
 0x105   :  { %v1158_v17 = vpop.eup %1157 }
 0x106   :  { %v268_v20 = vmul.f32 0.0, %v1158_v17 }
 0x166   :  { %v271_v18 = vpop.permute.xlu0 %270 }
 0x167   :  { %v273_v19 = vmul.f32 %v1158_v17, %v271_v18 }
 0x169   :  { %275 = vrot.lane.b32.xlu0 %v273_v19, %s1268_s1 }
 0x1db   :  { %v276_v21 = vpop.permute.xlu0 %275 }
 0x1dc   :  { %v278_v22 = vadd.f32 %v276_v21, %v268_v20  ;;  %v48_v21 = vld [vmem:[#allocation2 + $0x20] sm:$0xff] }
 0x1dd   :  { %1080 = vmatprep.mubr.msk.f32.mxu0 %vm56_vm1, %v48_v21 }
 0x1de   :  { %1159 = vtanh.f32 %v278_v22 }
 0x1eb   :  { %v1160_v23 = vpop.eup %1159 }
 0x1ec   :  { %281 = vrot.lane.b32.xlu1 %v1160_v23, %s1268_s1  ;;  %v50_v23 = vld [vmem:[#allocation2 + $0x30] sm:$0xff] }
 0x25e   :  { %v282_v24 = vpop.permute.xlu1 %281 }
 0x25f   :  { %v284_v25 = vmul.f32 %v1158_v17, %v282_v24  ;;  %v51_v24 = vld [vmem:[#allocation2 + $0x38] sm:$0xff] }
 0x261   :  { %286 = vrot.lane.b32.xlu1 %v284_v25, %s1269_s21 }
 0x2d3   :  { %v287_v26 = vpop.permute.xlu1 %286 }
 0x2d4   :  { %1098 = vmatmul.mubr.msk.f32.vlgmr.msra.gmra.mxu1 %vm186_vm2, %v287_v26 }
 0x2d5   :  { %1101 = vmatpush3.msra.mxu1 %v1296_v3  ;;  %1104 = vmatprep.mubr.msk.f32.mxu1 %vm1266_vm0, %v1265_v0 }
 0x2d6   :  { %1102 = vmatprep.subr.mxu1 %v1265_v0 }
 0x2d7   :  { %1103 = vmatpush3.msra.mxu1 %v1299_v5 }
 0x2d8   :  { %1107 = vmatprep.subr.mxu1 %v1265_v0 }
 0x394   :  { %v356_v28 = vpop.f32.mrf.mxu1 }
 0x395   :  { %v360_v29 = vadd.f32 %v356_v28, %v153_v27 }
 0x396   :  { %v1099_v30 = vpop.f32.mrf.mxu1 }
 0x397   :  { %1161 = vtanh.f32 %v360_v29  ;;  %v1025_v32 = vmul.f32 -1.442695, %v360_v29 }
 0x399   :  { %1163 = vpow2.f32 %v1025_v32 }
 0x3a4   :  { %v1162_v31 = vpop.eup %1161 }
 0x3a5   :  { %370 = vrot.lane.b32.xlu0 %v1162_v31, %s1267_s0 }
 0x3a6   :  { %v1164_v33 = vpop.eup %1163 }
 0x3a7   :  { %v364_v34 = vadd.f32 1.0, %v1164_v33 }
 0x3a9   :  { %1165 = vrcp.f32 %v364_v34 }
 0x3b6   :  { %v1166_v35 = vpop.eup %1165 }
 0x3b7   :  { %v368_v38 = vmul.f32 %v1166_v35, %v278_v22  ;;  %v49_v22 = vld [vmem:[#allocation2 + $0x28] sm:$0xff] }
 0x3b8   :  { %1081 = vmatmul.mubr.msk.f32.gmra.mxu0 %vm56_vm1, %v49_v22 }
 0x3b9   :  { %1083 = vmatprep.mubr.msk.f32.mxu0 %vm56_vm1, %v50_v23 }
 0x3bc   :  { %1084 = vmatmul.mubr.msk.f32.gmra.mxu0 %vm56_vm1, %v51_v24 }
 0x3bd   :  { %1118 = vmatprep.mubr.msk.f32.mxu0 %vm1266_vm0, %v1265_v0 }
 0x417   :  { %v371_v36 = vpop.permute.xlu0 %370 }
 0x418   :  { %v373_v37 = vmul.f32 %v1166_v35, %v371_v36 }
 0x41a   :  { %375 = vrot.lane.b32.xlu1 %v373_v37, %s1268_s1 }
 0x478   :  { %v1082_v29 = vpop.f32.mrf.mxu0 }
 0x47a   :  { %v167_v30 = vpop.f32.mrf.mxu0 }
 0x47b   :  { %v168_v33 = vadd.f32 %v1318_v7, %v167_v30 }
 0x47c   :  { %v1375_v31 = vpop.f32.mrf.mxu0 }
 0x47d   :  { %v183_v24 = vadd.f32 %v1375_v31, %v1318_v7 }
 0x47e   :  { %v177_v32 = vpop.f32.mrf.mxu0 }
 0x48c   :  { %v376_v39 = vpop.permute.xlu1 %375 }
 0x48d   :  { %v378_v40 = vadd.f32 %v376_v39, %v368_v38 }
 0x48f   :  { %1167 = vtanh.f32 %v378_v40 }
 0x49c   :  { %v1168_v43 = vpop.eup %1167 }
 0x49d   :  { %381 = vrot.lane.b32.xlu0 %v1168_v43, %s1268_s1 }
 0x50f   :  { %v382_v44 = vpop.permute.xlu0 %381 }
 0x510   :  { %v384_v45 = vmul.f32 %v1166_v35, %v382_v44 }
 0x512   :  { %386 = vrot.lane.b32.xlu1 %v384_v45, %s1269_s21 }
 0x584   :  { %v387_v46 = vpop.permute.xlu1 %386 }
 0x585   :  { %1105 = vmatmul.mubr.msk.f32.vlgmr.msra.gmra.mxu1 %vm186_vm2, %v387_v46 }
 0x586   :  { %1108 = vmatpush3.msra.mxu1 %v1296_v3  ;;  %1111 = vmatprep.mubr.msk.f32.mxu1 %vm1266_vm0, %v1265_v0 }
 0x587   :  { %1109 = vmatprep.subr.mxu1 %v1265_v0 }
 0x588   :  { %1110 = vmatpush3.msra.mxu1 %v1299_v5 }
 0x589   :  { %1121 = vmatprep.subr.mxu1 %v1265_v0 }
 0x645   :  { %v456_v50 = vpop.f32.mrf.mxu1 }
 0x646   :  { %v460_v51 = vadd.f32 %v456_v50, %v158_v49 }
 0x647   :  { %v1106_v52 = vpop.f32.mrf.mxu1 }
 0x648   :  { %1169 = vtanh.f32 %v460_v51  ;;  %v1027_v54 = vmul.f32 -1.442695, %v460_v51  ;;  %v173_v51 = vadd.f32 %v1082_v29, %v1318_v7 }
 0x64a   :  { %1171 = vpow2.f32 %v1027_v54 }
 0x655   :  { %v1170_v53 = vpop.eup %1169 }
 0x656   :  { %470 = vrot.lane.b32.xlu0 %v1170_v53, %s1267_s0 }
 0x657   :  { %v1172_v55 = vpop.eup %1171 }
 0x658   :  { %v464_v56 = vadd.f32 1.0, %v1172_v55 }
 0x65a   :  { %1173 = vrcp.f32 %v464_v56 }
 0x667   :  { %v1174_v57 = vpop.eup %1173 }
 0x668   :  { %v468_v60 = vmul.f32 %v1174_v57, %v378_v40 }
 0x6c8   :  { %v471_v58 = vpop.permute.xlu0 %470 }
 0x6c9   :  { %v473_v59 = vmul.f32 %v1174_v57, %v471_v58 }
 0x6cb   :  { %475 = vrot.lane.b32.xlu1 %v473_v59, %s1268_s1 }
 0x73d   :  { %v476_v61 = vpop.permute.xlu1 %475 }
 0x73e   :  { %v478_v62 = vadd.f32 %v476_v61, %v468_v60 }
 0x740   :  { %1175 = vtanh.f32 %v478_v62 }
 0x74d   :  { %v1176_v63 = vpop.eup %1175 }
 0x74e   :  { %481 = vrot.lane.b32.xlu0 %v1176_v63, %s1268_s1 }
 0x7c0   :  { %v482_v1 = vpop.permute.xlu0 %481 }
 0x7c1   :  { %v484_v2 = vmul.f32 %v1174_v57, %v482_v1 }
 0x7c3   :  { %486 = vrot.lane.b32.xlu1 %v484_v2, %s1269_s21 }
 0x835   :  { %v487_v4 = vpop.permute.xlu1 %486 }
 0x836   :  { %1112 = vmatmul.mubr.msk.f32.vlgmr.msra.gmra.mxu1 %vm186_vm2, %v487_v4  ;;  %v178_v4 = vadd.f32 %v1318_v7, %v177_v32 }
 0x837   :  { %1122 = vmatpush3.msra.mxu1 %v1296_v3  ;;  %1125 = vmatprep.mubr.msk.f32.mxu1 %vm1266_vm0, %v1265_v0 }
 0x838   :  { %1123 = vmatprep.subr.mxu1 %v1265_v0 }
 0x839   :  { %1124 = vmatpush3.msra.mxu1 %v1299_v5 }
 0x83a   :  { %1135 = vmatprep.subr.mxu1 %v1265_v0 }
 0x8f6   :  { %v556_v8 = vpop.f32.mrf.mxu1 }
 0x8f7   :  { %v560_v9 = vadd.f32 %v556_v8, %v163_v6 }
 0x8f8   :  { %v1113_v10 = vpop.f32.mrf.mxu1 }
 0x8f9   :  { %1177 = vtanh.f32 %v560_v9  ;;  %v1029_v12 = vmul.f32 -1.442695, %v560_v9 }
 0x8fb   :  { %1179 = vpow2.f32 %v1029_v12 }
 0x906   :  { %v1178_v11 = vpop.eup %1177 }
 0x907   :  { %570 = vrot.lane.b32.xlu0 %v1178_v11, %s1267_s0 }
 0x908   :  { %v1180_v13 = vpop.eup %1179 }
 0x909   :  { %v564_v14 = vadd.f32 1.0, %v1180_v13 }
 0x90b   :  { %1181 = vrcp.f32 %v564_v14 }
 0x918   :  { %v1182_v15 = vpop.eup %1181 }
 0x919   :  { %v568_v18 = vmul.f32 %v1182_v15, %v478_v62 }
 0x979   :  { %v571_v16 = vpop.permute.xlu0 %570 }
 0x97a   :  { %v573_v17 = vmul.f32 %v1182_v15, %v571_v16 }
 0x97c   :  { %575 = vrot.lane.b32.xlu1 %v573_v17, %s1268_s1 }
 0x9ee   :  { %v576_v19 = vpop.permute.xlu1 %575 }
 0x9ef   :  { %v578_v20 = vadd.f32 %v576_v19, %v568_v18 }
 0x9f1   :  { %1183 = vtanh.f32 %v578_v20 }
 0x9fe   :  { %v1184_v25 = vpop.eup %1183 }
 0x9ff   :  { %581 = vrot.lane.b32.xlu0 %v1184_v25, %s1268_s1 }
 0xa71   :  { %v582_v26 = vpop.permute.xlu0 %581 }
 0xa72   :  { %v584_v27 = vmul.f32 %v1182_v15, %v582_v26 }
 0xa74   :  { %586 = vrot.lane.b32.xlu1 %v584_v27, %s1269_s21 }
 0xae6   :  { %v587_v28 = vpop.permute.xlu1 %586 }
 0xae7   :  { %1119 = vmatmul.mubr.msk.f32.vlgmr.msra.gmra.mxu0 %vm186_vm2, %v587_v28 }
 0xae8   :  { %1129 = vmatpush3.msra.mxu0 %v1296_v3  ;;  %1132 = vmatprep.mubr.msk.f32.mxu0 %vm1266_vm0, %v1265_v0 }
 0xae9   :  { %1130 = vmatprep.subr.mxu0 %v1265_v0 }
 0xaea   :  { %1131 = vmatpush3.msra.mxu0 %v1299_v5 }
 0xba7   :  { %v656_v34 = vpop.f32.mrf.mxu0 }
 0xba8   :  { %v660_v35 = vadd.f32 %v656_v34, %v168_v33 }
 0xba9   :  { %v1120_v36 = vpop.f32.mrf.mxu0 }
 0xbaa   :  { %1185 = vtanh.f32 %v660_v35  ;;  %v1031_v38 = vmul.f32 -1.442695, %v660_v35  ;;  %v1038_v36 = vld [vmem:[#allocation4 + $0x19] ss:$0 sm:$0xff] }
 0xbac   :  { %1187 = vpow2.f32 %v1031_v38 }
 0xbb7   :  { %v1186_v37 = vpop.eup %1185 }
 0xbb8   :  { %670 = vrot.lane.b32.xlu0 %v1186_v37, %s1267_s0 }
 0xbb9   :  { %v1188_v39 = vpop.eup %1187 }
 0xbba   :  { %v664_v40 = vadd.f32 1.0, %v1188_v39 }
 0xbbc   :  { %1189 = vrcp.f32 %v664_v40 }
 0xbc9   :  { %v1190_v41 = vpop.eup %1189 }
 0xbca   :  { %v668_v44 = vmul.f32 %v1190_v41, %v578_v20 }
 0xc2a   :  { %v671_v42 = vpop.permute.xlu0 %670 }
 0xc2b   :  { %v673_v43 = vmul.f32 %v1190_v41, %v671_v42 }
 0xc2d   :  { %675 = vrot.lane.b32.xlu1 %v673_v43, %s1268_s1 }
 0xc9f   :  { %v676_v45 = vpop.permute.xlu1 %675 }
 0xca0   :  { %v678_v46 = vadd.f32 %v676_v45, %v668_v44 }
 0xca2   :  { %1191 = vtanh.f32 %v678_v46 }
 0xcaf   :  { %v1192_v47 = vpop.eup %1191 }
 0xcb0   :  { %681 = vrot.lane.b32.xlu0 %v1192_v47, %s1268_s1 }
 0xd22   :  { %v682_v48 = vpop.permute.xlu0 %681 }
 0xd23   :  { %v684_v49 = vmul.f32 %v1190_v41, %v682_v48 }
 0xd25   :  { %686 = vrot.lane.b32.xlu1 %v684_v49, %s1269_s21 }
 0xd97   :  { %v687_v50 = vpop.permute.xlu1 %686 }
 0xd98   :  { %1126 = vmatmul.mubr.msk.f32.vlgmr.msra.gmra.mxu1 %vm186_vm2, %v687_v50 }
 0xd99   :  { %1136 = vmatpush3.msra.mxu1 %v1296_v3  ;;  %1139 = vmatprep.mubr.msk.f32.mxu1 %vm1266_vm0, %v1265_v0 }
 0xd9a   :  { %1137 = vmatprep.subr.mxu1 %v1265_v0 }
 0xd9b   :  { %1138 = vmatpush3.msra.mxu1 %v1299_v5 }
 0xe58   :  { %v756_v52 = vpop.f32.mrf.mxu1 }
 0xe59   :  { %v760_v53 = vadd.f32 %v756_v52, %v173_v51 }
 0xe5a   :  { %v1127_v54 = vpop.f32.mrf.mxu1 }
 0xe5b   :  { %1193 = vtanh.f32 %v760_v53  ;;  %v1033_v56 = vmul.f32 -1.442695, %v760_v53 }
 0xe5d   :  { %1195 = vpow2.f32 %v1033_v56 }
 0xe68   :  { %v1194_v55 = vpop.eup %1193 }
 0xe69   :  { %770 = vrot.lane.b32.xlu0 %v1194_v55, %s1267_s0 }
 0xe6a   :  { %v1196_v57 = vpop.eup %1195 }
 0xe6b   :  { %v764_v3 = vadd.f32 1.0, %v1196_v57 }
 0xe6d   :  { %1197 = vrcp.f32 %v764_v3 }
 0xe7a   :  { %v1198_v58 = vpop.eup %1197 }
 0xe7b   :  { %v768_v0 = vmul.f32 %v1198_v58, %v678_v46 }
 0xedb   :  { %v771_v59 = vpop.permute.xlu0 %770 }
 0xedc   :  { %v773_v60 = vmul.f32 %v1198_v58, %v771_v59 }
 0xede   :  { %775 = vrot.lane.b32.xlu1 %v773_v60, %s1268_s1 }
 0xf50   :  { %v776_v5 = vpop.permute.xlu1 %775 }
 0xf51   :  { %v778_v61 = vadd.f32 %v776_v5, %v768_v0 }
 0xf53   :  { %1199 = vtanh.f32 %v778_v61 }
 0xf60   :  { %v1200_v62 = vpop.eup %1199 }
 0xf61   :  { %781 = vrot.lane.b32.xlu0 %v1200_v62, %s1268_s1 }
 0xfd3   :  { %v782_v63 = vpop.permute.xlu0 %781 }
 0xfd4   :  { %v784_v1 = vmul.f32 %v1198_v58, %v782_v63 }
 0xfd6   :  { %786 = vrot.lane.b32.xlu1 %v784_v1, %s1269_s21 }
0x1048   :  { %v787_v2 = vpop.permute.xlu1 %786 }
0x1049   :  { %1133 = vmatmul.mubr.msk.f32.vlgmr.msra.gmra.mxu0 %vm186_vm2, %v787_v2 }
0x1109   :  { %v856_v6 = vpop.f32.mrf.mxu0 }
0x110a   :  { %v860_v8 = vadd.f32 %v856_v6, %v178_v4 }
0x110b   :  { %v1134_v9 = vpop.f32.mrf.mxu0 }
0x110c   :  { %1201 = vtanh.f32 %v860_v8  ;;  %v1035_v11 = vmul.f32 -1.442695, %v860_v8 }
0x110e   :  { %1203 = vpow2.f32 %v1035_v11 }
0x1119   :  { %v1202_v10 = vpop.eup %1201 }
0x111a   :  { %870 = vrot.lane.b32.xlu0 %v1202_v10, %s1267_s0 }
0x111b   :  { %v1204_v12 = vpop.eup %1203 }
0x111c   :  { %v864_v13 = vadd.f32 1.0, %v1204_v12 }
0x111e   :  { %1205 = vrcp.f32 %v864_v13 }
0x112b   :  { %v1206_v14 = vpop.eup %1205 }
0x112c   :  { %v868_v17 = vmul.f32 %v1206_v14, %v778_v61 }
0x118c   :  { %v871_v15 = vpop.permute.xlu0 %870 }
0x118d   :  { %v873_v16 = vmul.f32 %v1206_v14, %v871_v15 }
0x118f   :  { %875 = vrot.lane.b32.xlu1 %v873_v16, %s1268_s1 }
0x1201   :  { %v876_v18 = vpop.permute.xlu1 %875 }
0x1202   :  { %v878_v19 = vadd.f32 %v876_v18, %v868_v17 }
0x1204   :  { %1207 = vtanh.f32 %v878_v19 }
0x1211   :  { %v1208_v20 = vpop.eup %1207 }
0x1212   :  { %881 = vrot.lane.b32.xlu0 %v1208_v20, %s1268_s1 }
0x1284   :  { %v882_v21 = vpop.permute.xlu0 %881 }
0x1285   :  { %v884_v22 = vmul.f32 %v1206_v14, %v882_v21 }
0x1287   :  { %886 = vrot.lane.b32.xlu1 %v884_v22, %s1269_s21 }
0x12f9   :  { %v887_v23 = vpop.permute.xlu1 %886 }
0x12fa   :  { %1140 = vmatmul.mubr.msk.f32.vlgmr.msra.gmra.mxu1 %vm186_vm2, %v887_v23 }
0x13ba   :  { %v956_v25 = vpop.f32.mrf.mxu1 }
0x13bb   :  { %v960_v26 = vadd.f32 %v956_v25, %v183_v24 }
0x13bc   :  { %v1141_v27 = vpop.f32.mrf.mxu1 }
0x13bd   :  { %1209 = vtanh.f32 %v960_v26  ;;  %v1037_v29 = vmul.f32 -1.442695, %v960_v26 }
0x13bf   :  { %1211 = vpow2.f32 %v1037_v29 }
0x13ca   :  { %v1210_v28 = vpop.eup %1209 }
0x13cb   :  { %970 = vrot.lane.b32.xlu0 %v1210_v28, %s1267_s0 }
0x13cc   :  { %v1212_v30 = vpop.eup %1211 }
0x13cd   :  { %v964_v32 = vadd.f32 1.0, %v1212_v30 }
0x13cf   :  { %1213 = vrcp.f32 %v964_v32 }
0x13dc   :  { %v1214_v33 = vpop.eup %1213 }
0x13dd   :  { %v968_v7 = vmul.f32 %v1214_v33, %v878_v19 }
0x143d   :  { %v971_v34 = vpop.permute.xlu0 %970 }
0x143e   :  { %v973_v35 = vmul.f32 %v1214_v33, %v971_v34 }
0x1440   :  { %975 = vrot.lane.b32.xlu1 %v973_v35, %s1268_s1 }
0x1444   :  { %990 = vrot.lane.b32.xlu1 %v1038_v36, %s1270_s22 }
0x14b2   :  { %v976_v31 = vpop.permute.xlu1 %975 }
0x14b3   :  { %v978_v37 = vadd.f32 %v976_v31, %v968_v7 }
0x14b5   :  { %1215 = vtanh.f32 %v978_v37 }
0x14b6   :  { %v991_v40 = vpop.permute.xlu1 %990 }
0x14c2   :  { %v1216_v38 = vpop.eup %1215 }
0x14c3   :  { %981 = vrot.lane.b32.xlu0 %v1216_v38, %s1268_s1 }
0x1535   :  { %v982_v39 = vpop.permute.xlu0 %981 }
0x1536   :  { %v984_v41 = vmul.f32 %v1214_v33, %v982_v39 }
0x1538   :  { %v993_v42 = vmul.f32 %v991_v40, %v984_v41 }
0x153a   :  { %995 = vrot.lane.b32.xlu0 %v993_v42, %s1269_s21 }
0x15ac   :  { %v996_v43 = vpop.permute.xlu0 %995 }
0x15ad   :  { %v998_v44 = vsel %vm186_vm2, %v996_v43, 0.0 }
0x15ae   :  { %999 = vadd.xlane.f32.xlu1 %v998_v44 }
0x1637   :  { %v1000_v45 = vpop.xlane.xlu1 %999 }
0x1638   :  { %v1001_v46 = vadd.f32 %v1038_v36, %v1000_v45 }
0x163a   :  { %1003 = vrot.lane.b32.xlu0 %v1001_v46, %s1271_s23 }
0x16ac   :  { %v1004_v47 = vpop.permute.xlu0 %1003 }
0x16ad   :  { %1007 = vst.msk [vmem:[%s1412_s2] sm:$0xff] %vm1006_vm3, %v1004_v47 }
0x16ae   :  { %1012 = vsyncpa [#allocation3], 1 }
0x16af   :  { %1013 = vsyncpa [#allocation5], 1 }

</bundles_post_ra>
